<compile_context>
chip_gen: v5e
topology: v5e:2x2
jax: 0.10.0
libtpu: 0.0.40
codegen_flags: <defaults>
</compile_context>

<pallas_src>
import functools
import math

import jax
import jax.numpy as jnp
from jax import lax
from jax.experimental import pallas as pl
from jax.experimental.pallas import tpu as pltpu

# ---- module "parameters" (deterministic, derived from __init__ arguments) -------------
LABEL_SMOOTHING = 0.1
TGT_VOCAB_SIZE = 256
IGNORE_INDEX = 1                      # OpenNMT passes the padding index (non-negative)
SMOOTHING_VALUE = LABEL_SMOOTHING / (TGT_VOCAB_SIZE - 2)
CONFIDENCE = 1.0 - LABEL_SMOOTHING
# Per-valid-row entropy term sum_c prob*log(prob): a compile-time constant.
ROW_ENTROPY = (CONFIDENCE * math.log(CONFIDENCE)
               + (TGT_VOCAB_SIZE - 2) * SMOOTHING_VALUE * math.log(SMOOTHING_VALUE))


def _label_smoothing_kl_kernel(out_ref, tgt_ref, loss_ref, acc_ref):
    """Grid = (parts, batch_tiles). One step handles a (tile_b, V) tile of log-probs."""
    i = pl.program_id(1)

    @pl.when(i == 0)
    def _init():
        acc_ref[...] = jnp.zeros_like(acc_ref)

    logp = out_ref[...].astype(jnp.float32)      # (tb, V) log-probs (upcast if bf16 input)
    tgt = tgt_ref[...]                           # (tb, 1) int32
    tb, v = logp.shape

    col = lax.broadcasted_iota(jnp.int32, (tb, v), 1)

    # Closed-form KL per row (no log(prob), no full prob tensor):
    #   cross = sum_c prob[c] * logp[c]
    #         = s*rowsum(logp) + (conf - s)*logp[target] - s*logp[ignore_index]
    row_sum = jnp.sum(logp, axis=-1, keepdims=True)                               # (tb,1)
    tgt_logp = jnp.sum(jnp.where(col == tgt, logp, 0.0), axis=-1, keepdims=True)  # (tb,1)
    ign_logp = logp[:, IGNORE_INDEX:IGNORE_INDEX + 1]                             # (tb,1)

    cross = (SMOOTHING_VALUE * row_sum
             + (CONFIDENCE - SMOOTHING_VALUE) * tgt_logp
             - SMOOTHING_VALUE * ign_logp)
    valid = (tgt != IGNORE_INDEX).astype(jnp.float32)                             # (tb,1)

    acc_ref[...] += valid * (ROW_ENTROPY - cross)                                 # (tb,1)

    @pl.when(i == pl.num_programs(1) - 1)
    def _finalize():
        total = jnp.sum(acc_ref[...])
        # Lane-dense (8,128) partial-output block; wrapper reads element [0, 0].
        loss_ref[...] = jnp.broadcast_to(total, loss_ref.shape).astype(loss_ref.dtype)


@functools.partial(jax.jit, static_argnames=("tile_b", "num_parts"))
def label_smoothing_loss(output, target, tile_b=1024, num_parts=2):
    """output: (B, V) float32/bfloat16 log-probs; target: (B,) int. Returns scalar f32."""
    b, v = output.shape

    # Shrink the tile to the (per-part) batch when it is small; keep it a multiple of 8.
    rows_per_part = -(-b // num_parts)
    tile_b = int(min(tile_b, max(8, ((rows_per_part + 7) // 8) * 8)))

    part_rows = tile_b * (-(-rows_per_part // tile_b))
    padded_b = num_parts * part_rows
    inner = part_rows // tile_b

    tgt2d = target.reshape(b, 1).astype(jnp.int32)
    pad = padded_b - b
    if pad:
        # Padded rows get target == IGNORE_INDEX, so they contribute exactly zero.
        output = jnp.pad(output, ((0, pad), (0, 0)))
        tgt2d = jnp.pad(tgt2d, ((0, pad), (0, 0)), constant_values=IGNORE_INDEX)

    tile_bytes = tile_b * v * output.dtype.itemsize
    vmem_limit = int(min(48 * 2**20, max(8 * 2**20, 4 * tile_bytes + (1 << 20))))

    partials = pl.pallas_call(
        _label_smoothing_kl_kernel,
        out_shape=jax.ShapeDtypeStruct((num_parts * 8, 128), jnp.float32),
        grid_spec=pltpu.PrefetchScalarGridSpec(
            num_scalar_prefetch=0,
            grid=(num_parts, inner),
            in_specs=[
                pl.BlockSpec((tile_b, v), lambda p, i: (p * inner + i, 0)),
                pl.BlockSpec((tile_b, 1), lambda p, i: (p * inner + i, 0)),
            ],
            out_specs=pl.BlockSpec((8, 128), lambda p, i: (p, 0)),
            scratch_shapes=[pltpu.VMEM((tile_b, 1), jnp.float32)],
        ),
        compiler_params=pltpu.CompilerParams(
            dimension_semantics=("parallel", "arbitrary"),
            vmem_limit_bytes=vmem_limit,
        ),
    )(output, tgt2d)

    # One partial per part (every element of a part's block holds the same value).
    return jnp.sum(partials[0::8, 0])


def _reference(output, target):
    b, v = output.shape
    col = jnp.arange(v)[None, :]
    tgt = target[:, None]
    prob = jnp.full((b, v), SMOOTHING_VALUE, jnp.float32)
    prob = jnp.where(col == IGNORE_INDEX, 0.0, prob)
    prob = jnp.where(col == tgt, CONFIDENCE, prob)
    prob = jnp.where(tgt == IGNORE_INDEX, 0.0, prob)
    return jnp.sum(jnp.where(prob > 0.0, prob * (jnp.log(prob) - output), 0.0))


if __name__ == "__main__":
    key = jax.random.PRNGKey(0)
    k_logits, k_tgt = jax.random.split(key)

    B = 16
    logits = jax.random.normal(k_logits, (B, TGT_VOCAB_SIZE), dtype=jnp.float32)
    output = jax.nn.log_softmax(logits, axis=-1)          # module expects log-probs
    target = jax.random.randint(k_tgt, (B,), 0, TGT_VOCAB_SIZE, dtype=jnp.int32)
    # Make a couple of rows "padding" to exercise the ignore_index masking path.
    target = target.at[0].set(IGNORE_INDEX).at[5].set(IGNORE_INDEX)

    loss = label_smoothing_loss(output, target)
    loss = jax.block_until_ready(loss)

    ref = _reference(output, target)
    assert jnp.allclose(loss, ref, rtol=1e-5, atol=1e-4), (loss, ref)

    print("KERNEL_OK")
</pallas_src>

<mosaic_0001>
module attributes {stable_mosaic.version = 11 : i64} {
  func.func @_label_smoothing_kl_kernel(%arg0: i32, %arg1: i32, %arg2: memref<8x256xf32, #tpu.memory_space<vmem>>, %arg3: memref<8x1xi32, #tpu.memory_space<vmem>>, %arg4: memref<8x128xf32, #tpu.memory_space<vmem>>, %arg5: memref<8x1xf32, #tpu.memory_space<vmem>>) attributes {dimension_semantics = [#tpu.dimension_semantics<parallel>, #tpu.dimension_semantics<arbitrary>], iteration_bounds = array<i64: 2, 1>, scalar_prefetch = 0 : i64, scratch_operands = 1 : i64, tpu.core_type = #tpu.core_type<tc>, window_params = [{transform_indices = @transform_0, window_bounds = array<i64: 8, 256>}, {transform_indices = @transform_1, window_bounds = array<i64: 8, 1>}, {transform_indices = @transform_2, window_bounds = array<i64: 8, 128>}]} {
    %c0_i32 = arith.constant 0 : i32
    %0 = arith.cmpi eq, %arg1, %c0_i32 : i32
    %1 = arith.extui %0 : i1 to i32
    %c0_i32_0 = arith.constant 0 : i32
    %2 = arith.cmpi ne, %1, %c0_i32_0 : i32
    scf.if %2 {
      %cst_16 = arith.constant 0.000000e+00 : f32
      %36 = vector.broadcast %cst_16 : f32 to vector<8x1xf32>
      %c0_17 = arith.constant 0 : index
      %c0_18 = arith.constant 0 : index
      %37 = vector.load %arg5[%c0_17, %c0_18] : memref<8x1xf32, #tpu.memory_space<vmem>>, vector<8x1xf32>
      tpu.vector_store %arg5[%c0_17, %c0_18], %36 {strides = array<i32>} : memref<8x1xf32, #tpu.memory_space<vmem>>, vector<8x1xf32>,
    } else {
    }
    %c0 = arith.constant 0 : index
    %c0_1 = arith.constant 0 : index
    %3 = vector.load %arg2[%c0, %c0_1] : memref<8x256xf32, #tpu.memory_space<vmem>>, vector<8x256xf32>
    %c0_2 = arith.constant 0 : index
    %c0_3 = arith.constant 0 : index
    %4 = vector.load %arg3[%c0_2, %c0_3] : memref<8x1xi32, #tpu.memory_space<vmem>>, vector<8x1xi32>
    %5 = tpu.iota {dimensions = array<i32: 1>} : vector<8x256xi32>
    %cst = arith.constant dense<0.000000e+00> : vector<8xf32>
    %6 = vector.multi_reduction <add>, %3, %cst [1] : vector<8x256xf32> to vector<8xf32>
    %7 = vector.shape_cast %6 : vector<8xf32> to vector<8x1xf32>
    %8 = vector.broadcast %4 : vector<8x1xi32> to vector<8x256xi32>
    %9 = arith.cmpi eq, %5, %8 : vector<8x256xi32>
    %cst_4 = arith.constant 0.000000e+00 : f32
    %10 = vector.broadcast %cst_4 : f32 to vector<8x256xf32>
    %11 = arith.select %9, %3, %10 : vector<8x256xi1>, vector<8x256xf32>
    %cst_5 = arith.constant dense<0.000000e+00> : vector<8xf32>
    %12 = vector.multi_reduction <add>, %11, %cst_5 [1] : vector<8x256xf32> to vector<8xf32>
    %13 = vector.shape_cast %12 : vector<8xf32> to vector<8x1xf32>
    %14 = vector.extract_strided_slice %3 {offsets = [0, 1], sizes = [8, 1], strides = [1, 1]} : vector<8x256xf32> to vector<8x1xf32>
    %cst_6 = arith.constant 3.93700786E-4 : f32
    %15 = vector.broadcast %cst_6 : f32 to vector<8x1xf32>
    %16 = arith.mulf %15, %7 : vector<8x1xf32>
    %cst_7 = arith.constant 0.899606287 : f32
    %17 = vector.broadcast %cst_7 : f32 to vector<8x1xf32>
    %18 = arith.mulf %17, %13 : vector<8x1xf32>
    %19 = arith.addf %16, %18 : vector<8x1xf32>
    %cst_8 = arith.constant 3.93700786E-4 : f32
    %20 = vector.broadcast %cst_8 : f32 to vector<8x1xf32>
    %21 = arith.mulf %20, %14 : vector<8x1xf32>
    %22 = arith.subf %19, %21 : vector<8x1xf32>
    %c1_i32 = arith.constant 1 : i32
    %23 = vector.broadcast %c1_i32 : i32 to vector<8x1xi32>
    %24 = arith.cmpi ne, %4, %23 : vector<8x1xi32>
    %25 = arith.extui %24 : vector<8x1xi1> to vector<8x1xi32>
    %26 = arith.sitofp %25 : vector<8x1xi32> to vector<8x1xf32>
    %c0_9 = arith.constant 0 : index
    %c0_10 = arith.constant 0 : index
    %27 = vector.load %arg5[%c0_9, %c0_10] : memref<8x1xf32, #tpu.memory_space<vmem>>, vector<8x1xf32>
    %cst_11 = arith.constant -0.878816425 : f32
    %28 = vector.broadcast %cst_11 : f32 to vector<8x1xf32>
    %29 = arith.subf %28, %22 : vector<8x1xf32>
    %30 = arith.mulf %26, %29 : vector<8x1xf32>
    %31 = arith.addf %27, %30 : vector<8x1xf32>
    %c0_12 = arith.constant 0 : index
    %c0_13 = arith.constant 0 : index
    %32 = vector.load %arg5[%c0_12, %c0_13] : memref<8x1xf32, #tpu.memory_space<vmem>>, vector<8x1xf32>
    tpu.vector_store %arg5[%c0_12, %c0_13], %31 {strides = array<i32>} : memref<8x1xf32, #tpu.memory_space<vmem>>, vector<8x1xf32>,
    %c0_i32_14 = arith.constant 0 : i32
    %33 = arith.cmpi eq, %arg1, %c0_i32_14 : i32
    %34 = arith.extui %33 : i1 to i32
    %c0_i32_15 = arith.constant 0 : i32
    %35 = arith.cmpi ne, %34, %c0_i32_15 : i32
    scf.if %35 {
      %c0_16 = arith.constant 0 : index
      %c0_17 = arith.constant 0 : index
      %36 = vector.load %arg5[%c0_16, %c0_17] : memref<8x1xf32, #tpu.memory_space<vmem>>, vector<8x1xf32>
      %37 = vector.shape_cast %36 : vector<8x1xf32> to vector<1x8x1xf32>
      %cst_18 = arith.constant dense<0.000000e+00> : vector<1xf32>
      %38 = vector.multi_reduction <add>, %37, %cst_18 [1, 2] : vector<1x8x1xf32> to vector<1xf32>
      %39 = vector.shape_cast %38 : vector<1xf32> to vector<1x1x1xf32>
      %40 = vector.extract %39[0, 0, 0] : f32 from vector<1x1x1xf32>
      %41 = vector.broadcast %40 : f32 to vector<8x128xf32>
      %c0_19 = arith.constant 0 : index
      %c0_20 = arith.constant 0 : index
      %42 = vector.load %arg4[%c0_19, %c0_20] : memref<8x128xf32, #tpu.memory_space<vmem>>, vector<8x128xf32>
      tpu.vector_store %arg4[%c0_19, %c0_20], %41 {strides = array<i32>} : memref<8x128xf32, #tpu.memory_space<vmem>>, vector<8x128xf32>,
    } else {
    }
    return
  }
  func.func @transform_0(%arg0: i32, %arg1: i32) -> (i32, i32) {
    %c1_i32 = arith.constant 1 : i32
    %0 = arith.muli %arg0, %c1_i32 : i32
    %1 = arith.addi %0, %arg1 : i32
    %c0_i32 = arith.constant 0 : i32
    %c0_i32_0 = arith.constant 0 : i32
    return %1, %c0_i32 : i32, i32
  }
  func.func @transform_1(%arg0: i32, %arg1: i32) -> (i32, i32) {
    %c1_i32 = arith.constant 1 : i32
    %0 = arith.muli %arg0, %c1_i32 : i32
    %1 = arith.addi %0, %arg1 : i32
    %c0_i32 = arith.constant 0 : i32
    %c0_i32_0 = arith.constant 0 : i32
    return %1, %c0_i32 : i32, i32
  }
  func.func @transform_2(%arg0: i32, %arg1: i32) -> (i32, i32) {
    %c0_i32 = arith.constant 0 : i32
    %c0_i32_0 = arith.constant 0 : i32
    return %arg0, %c0_i32 : i32, i32
  }
}

</mosaic_0001>

<bundles_post_ra>
// kernel: label_smoothing_loss.1
= control target key start
LH: loop header
LB: loop body
LE: loop exit
PB: predicated region body
PF: predicated region fallthrough
CT: control target
= control target key end

     0   :  { %7 = vsyncpa [#allocation4], 0  ;;  %s621_s0 = inlined_call_operand.hbm [shape: f32[16,256], index: 0, kind: input, shape index: {}]   ;;  %s622_s1 = inlined_call_operand.vmem [shape: s32[16,1], index: 1, kind: input, shape index: {}]   ;;  %s623_s2 = inlined_call_operand.vmem [shape: f32[16,128], index: 2, kind: output, shape index: {}]  }
   0x1   :  { %9 = vsyncpa [#allocation4 + $0x1], 0  ;;  %s523_s9 = smov 0   ;;  %s525_s10 = smov 0  }
   0x2   :  { %s527_s11 = smov 0   ;;  %s529_s12 = smov 0  }
   0x3   :  { %s531_s13 = smov 0   ;;  %s533_s14 = smov 0  }
   0x4 LB: > { %s347_s15 = sadd.s32 4294967295, %s503_s14   ;;  %s27_s16 = sadd.s32 1, %s499_s13  ;;  %s503_s14 = sphi %s533_s14, %s15_s14   ;;  %s499_s13 = sphi %s531_s13, %s630_s13   ;;  %s495_s12 = sphi %s529_s12, %s629_s12   ;;  %s491_s11 = sphi %s527_s11, %s628_s11   ;;  %s487_s10 = sphi %s525_s10, %s627_s10   ;;  %s483_s9 = sphi %s523_s9, %s626_s9  }
   0x5   : > { %p29_p0 = scmp.ge.s32.totalorder %s27_s16, 2  ;;  %s36_s17 = sadd.s32 1, %s491_s11 }
   0x6   : > { %p43_p1 = scmp.ne.s32.totalorder %s491_s11, %s487_s10  ;;  %p44_p2 = scmp.eq.s32.totalorder %s503_s14, 0 }
   0x7   : > { %s632_s16 = smov (%p29_p0, %s27_s16), 0  ;;  %p49_p4 = scmp.ne.s32.totalorder %s487_s10, %s483_s9 }
   0x8   : > { %p559_p3 = por %p44_p2, %p43_p1  ;;  %s33_s19 = ssub.s32 %s499_s13, %s632_s16 }
   0x9   : > { %p50_p5 = scmp.eq.s32.totalorder %s347_s15, 0  ;;  %p34_p6 = scmp.eq.s32.totalorder %s33_s19, 0 }
   0xa   : > { %p370_p8 = scmp.lt.s32.totalorder %s503_s14, 2  ;;  %s127_s22 = sand.u32 1, %s491_s11  }
   0xb   : > { %p566_p7 = por %p50_p5, %p49_p4  ;;  %s361_s23 = sshll.u32 %s499_s13, 4 }
   0xc   : > { %s572_s21 = scalar_select %p34_p6, %s491_s11, %s36_s17  }
   0xd   : > { %s351_s24 = sshll.u32 %s127_s22, 4  ;;  %s137_s27 = scalar_lea.hbm %s621_s0, %s361_s23 }
   0xe   : > { %s139_s28 = sshll.u32 %s137_s27, 4  ;;  %s131_s29 = scalar_lea.vmem [#allocation3], %s351_s24  ;;  %s140_s28 = int_to_ptr.hbm [resolvable:$true] %s139_s28 }
   0xf   : > { %s141_s30 = sshll.u32 %s131_s29, 4  ;;  %p367_p9 = pnand %p370_p8, %p559_p3  ;;  %s142_s30 = int_to_ptr.vmem [resolvable:$true] %s141_s30 }
  0x10   : > { %p354_p10 = scmp.ge.s32.totalorder %s503_s14, 1  ;;  %p155_p11 = scmp.lt.s32.totalorder %s503_s14, 3 }
  0x11   : > { %s128_s3 = scalar_lea.sflag [#allocation4], %s127_s22 }
  0x12   : > { %369 = dma.hbm_to_vmem [thread:$0]  (!%p367_p9), %s140_s28, 256, %s142_s30, %s128_s3  }
  0x13   : > { %p156_p12 = pnand %p354_p10, %p155_p11 }
  0x14   : > { %s161_s4 = sand.u32 (!%p156_p12), 1, %s487_s10  }
  0x15   : > { %159 = sbr.rel (%p156_p12) target bundleno = 584 (0x248), region = 28  ;;  %s355_s5 = sshll.u32 (!%p156_p12), %s161_s4, 4 }
  0x16   : > { %s162_s6 = scalar_lea.sflag (!%p156_p12), [#allocation4], %s161_s4  ;;  %s165_s7 = scalar_lea.vmem (!%p156_p12), [#allocation3], %s355_s5 }
  0x1a   : > { %478 = dma.done.wait (%p566_p7), %s162_s6, 256  }
  0x1b   : > { %480 = vsyncadd (%p566_p7), %s162_s6, 4294967040  ;;  %p193_p13 = scmp.lt.s32.totalorder %s495_s12, 1  ;;  %v505_v0 = vmov 0   ;;  %v208_v2 = vld [vmem:[%s165_s7] sm:$0xff]  ;;  %v209_v3 = vld [vmem:[%s165_s7 + $0x8] sm:$0xff]  ;;  %v211_v5 = vlaneseq  ;;  %s506_s18 = smov 127  }
  0x1c   : > { %422 = vset.pattern.permute.xlu0 %v505_v0  ;;  %v214_v4 = vadd.f32 %v209_v3, %v208_v2  ;;  %v230_v15 = vmul.f32 0.0003937008, %v208_v2  ;;  %vm206_vm2 = vcmask 7168   ;;  %v507_v20 = vmov 0.0  }
  0x1d   : > { %s634_s12 = smov (!%p193_p13, %s495_s12), 1  ;;  %v212_v6 = vand.u32 127, %v211_v5  ;;  %207 = vst.msk [vmem:[#allocation2] sm:$0xff] %vm206_vm2, %v507_v20 }
  0x1e   : > { %s356_s8 = sshll.u32 %s634_s12, 3 }
  0x1f   : > { %s196_s17 = scalar_lea.vmem %s622_s1, %s356_s8  ;;  %v213_v7 = vadd.s32 128, %v212_v6  ;;  %s201_s22 = scalar_lea.vmem %s623_s2, %s356_s8 }
  0x20   : > { %v210_v1 = vld [vmem:[%s196_s17] sm:$0xff] }
  0x21   : > { %218 = vperm.xlu0 %422, %v210_v1   ;;  %vm232_vm3 = vcmp.ne.s32.totalorder %v210_v1, 1 }
  0x22   : > { %v358_v21 = vsel %vm232_vm3, 1.0, %v507_v20 }
  0x24   : > { %v235_v23 = vld [vmem:[#allocation2] sm:$0xff] }
  0x4b   : > { %215 = vadd.xlane.f32.xlu0 %v214_v4 }
  0x93   : > { %v219_v8 = vpop.permute.xlu0 %218 }
  0x94   : > { %vm220_vm0 = vcmp.eq.s32.totalorder %v212_v6, %v219_v8  ;;  %vm221_vm1 = vcmp.eq.s32.totalorder %v213_v7, %v219_v8 }
  0x95   : > { %v222_v9 = vsel %vm220_vm0, %v208_v2, 0.0  ;;  %v223_v10 = vsel %vm221_vm1, %v209_v3, 0.0 }
  0x96   : > { %v224_v11 = vadd.f32 %v223_v10, %v222_v9 }
  0x98   : > { %225 = vadd.xlane.f32.xlu1 %v224_v11 }
  0xbe   : > { %v216_v12 = vpop.xlane.xlu0 %215 }
  0xbf   : > { %v227_v13 = vmul.f32 0.0003937008, %v216_v12 }
 0x10b   : > { %v226_v14 = vpop.xlane.xlu1 %225 }
 0x10c   : > { %v228_v16 = vmul.f32 0.8996063, %v226_v14 }
 0x10e   : > { %v229_v17 = vadd.f32 %v228_v16, %v227_v13 }
 0x110   : > { %v231_v18 = vsub.f32 %v229_v17, %v230_v15 }
 0x112   : > { %v236_v19 = vsub.f32 -0.8788164, %v231_v18 }
 0x114   : > { %238 = vrot.lane.b32.xlu1 %v236_v19, %s506_s18 }
 0x186   : > { %v239_v22 = vpop.permute.xlu1 %238 }
 0x187   : > { %v241_v24 = vmul.f32 %v358_v21, %v239_v22 }
 0x189   : > { %v242_v25 = vadd.f32 %v241_v24, %v235_v23 }
 0x18b   : > { %244 = vst.msk [vmem:[#allocation2] sm:$0xff] %vm206_vm2, %v242_v25 }
 0x192   : > { %v248_v26 = vld [vmem:[#allocation2] sm:$0xff] }
 0x193   : > { %v249_v27 = vsel %vm206_vm2, %v248_v26, 0.0 }
 0x194   : > { %250 = vadd.xlane.f32.xlu2 %v249_v27 }
 0x207   : > { %v251_v28 = vpop.xlane.xlu2 %250 }
 0x208   : > { %v252_v29 = vrot.slane %v251_v28, 4 }
 0x20a   : > { %v253_v30 = vadd.f32 %v252_v29, %v251_v28 }
 0x20c   : > { %v254_v31 = vrot.slane %v253_v30, 2 }
 0x20e   : > { %v255_v32 = vadd.f32 %v254_v31, %v253_v30 }
 0x210   : > { %v256_v33 = vrot.slane %v255_v32, 1 }
 0x212   : > { %v257_v34 = vadd.f32 %v256_v33, %v255_v32 }
 0x214   : > { %362 = vpush %v257_v34 }
 0x245   : > { %s363_s23 = spop %362 }
 0x246   : > { %v259_v35 = vstv %s363_s23 }
 0x247   : > { %260 = vst [vmem:[%s201_s22] sm:$0xff] %v259_v35 }
 0x248 PF: > { %s15_s14 = sadd.s32 1, %s503_s14   ;;  %s626_s9 = smov %s487_s10 }
 0x249   : > { %p12_p0 = scmp.ge.s32.totalorder %s15_s14, 4   ;;  %s627_s10 = smov %s491_s11 }
 0x24a   : > { %s628_s11 = smov %s572_s21  ;;  %s629_s12 = smov %s499_s13 }
 0x24b   : > { %s630_s13 = smov %s632_s16  ;;  %14 = sbr.rel (!%p12_p0) target bundleno = 4 (0x4), region = 79 }
 0x250   :  { %280 = vsyncpa [#allocation4], 1 }
 0x251   :  { %282 = vsyncpa [#allocation4 + $0x1], 1 }

</bundles_post_ra>
